<compile_context>
chip_gen: v5e
topology: v5e:2x2
jax: 0.10.0
libtpu: 0.0.40
codegen_flags: <defaults>
</compile_context>

<pallas_src>
import functools
import math

import jax
import jax.numpy as jnp
from jax.experimental import pallas as pl
from jax.experimental.pallas import tpu as pltpu


def _round_up(n, m):
    return ((n + m - 1) // m) * m


def _erf_f32(x):
    # Abramowitz & Stegun 7.1.26 polynomial erf (max abs error ~1.5e-7).
    # Uses only exp / mul / div / select, which all lower cleanly in Mosaic;
    # matches PyTorch's exact (erf-based) F.gelu to well below bf16 precision.
    a1, a2, a3, a4, a5 = 0.254829592, -0.284496736, 1.421413741, -1.453152027, 1.061405429
    p = 0.3275911
    ax = jnp.abs(x)
    t = 1.0 / (1.0 + p * ax)
    poly = ((((a5 * t + a4) * t + a3) * t + a2) * t + a1) * t
    y = 1.0 - poly * jnp.exp(-(ax * ax))
    return jnp.where(x < 0.0, -y, y)


def _gelu_exact(x):
    # PyTorch F.gelu default ('none' / erf-based): x * 0.5 * (1 + erf(x / sqrt(2)))
    return 0.5 * x * (1.0 + _erf_f32(x * (1.0 / math.sqrt(2.0))))


def ffn_kernel(x_ref, w1_ref, b1_ref, w2_ref, b2_ref, o_ref, *, hidden, mxu_dtype):
    # One row-tile per grid step.
    # Matmul 1: (tm, D) @ (D, 2H) -> f32
    h = jnp.dot(x_ref[...], w1_ref[...], preferred_element_type=jnp.float32)
    h = h + b1_ref[...].astype(jnp.float32)
    # GEGLU: first half * gelu(second half), f32 element-wise (VPU/EUP).
    a = h[:, :hidden]
    g = h[:, hidden:]
    u = a * _gelu_exact(g)
    # nn.Dropout(p=0.0) is the identity in this forward pass -> nothing to do.
    # Matmul 2: (tm, H) @ (H, D) -> f32 accumulate, bf16 MXU operands.
    out = jnp.dot(u.astype(mxu_dtype), w2_ref[...], preferred_element_type=jnp.float32)
    out = out + b2_ref[...].astype(jnp.float32)
    o_ref[...] = out.astype(o_ref.dtype)


def feed_forward(x, w1, b1, w2, b2, *, tile_rows=None, mxu_dtype=jnp.bfloat16):
    """x: (..., D); w1: (D, 2H), b1: (2H,), w2: (H, D), b2: (D,) with H = D*mult."""
    *lead, D = x.shape
    R = 1
    for s in lead:
        R *= s
    two_h = w1.shape[1]
    H = two_h // 2
    assert w2.shape == (H, D) and b1.shape == (two_h,) and b2.shape == (D,)

    # Cast MXU operands (activations in, weights) to bf16 once in the wrapper:
    # halves HBM traffic + VMEM footprint; accumulation stays f32 in-kernel.
    x2 = x.reshape(R, D).astype(mxu_dtype)
    w1_c = w1.astype(mxu_dtype)
    w2_c = w2.astype(mxu_dtype)
    b1_2 = b1.reshape(1, two_h).astype(jnp.float32)
    b2_2 = b2.reshape(1, D).astype(jnp.float32)

    # MXU/lane-friendly row tile with a real multi-step grid; ragged R is handled
    # by pl.cdiv + Pallas' masked tail block (no `R % tm == 0` assert).
    if tile_rows is None:
        target = 1024 if mxu_dtype == jnp.bfloat16 else 512   # multiples of 256 (v6e/v7x MXU)
        tile_rows = min(target, _round_up(R, 8))
    tm = tile_rows
    grid = (pl.cdiv(R, tm),)

    in_bytes = jnp.dtype(mxu_dtype).itemsize
    out_bytes = jnp.dtype(x.dtype).itemsize
    w_bytes = jnp.dtype(mxu_dtype).itemsize
    # VMEM budget: double-buffered x/out tiles + single-buffered weights/biases
    # + f32 intermediates (h, u). Clamped to v7x-safe 64 MiB.
    vmem_budget = (2 * tm * D * in_bytes
                   + 2 * tm * D * out_bytes
                   + (D * two_h + H * D) * w_bytes
                   + (two_h + D) * 4
                   + tm * (two_h + H) * 4)
    vmem_limit = int(min(max(32 * 2**20, 1.5 * vmem_budget), 64 * 2**20))
    # TODO(synk): for very large D (weights >~16-32 MiB) add N/K grid axes tiling
    # w1/w2 instead of keeping the full weights resident per step.

    flops = 2 * R * D * two_h + 2 * R * H * D
    bytes_accessed = (R * D * (in_bytes + out_bytes)
                      + (D * two_h + H * D) * w_bytes
                      + (two_h + D) * 4)

    invariant = pl.Buffered(1)  # loop-invariant operands: no need to double-buffer
    out = pl.pallas_call(
        functools.partial(ffn_kernel, hidden=H, mxu_dtype=mxu_dtype),
        out_shape=jax.ShapeDtypeStruct((R, D), x.dtype),
        grid=grid,
        in_specs=[
            pl.BlockSpec((tm, D), lambda i: (i, 0)),                              # x rows (pipelined)
            pl.BlockSpec((D, two_h), lambda i: (0, 0), pipeline_mode=invariant),  # W1
            pl.BlockSpec((1, two_h), lambda i: (0, 0), pipeline_mode=invariant),  # b1
            pl.BlockSpec((H, D), lambda i: (0, 0), pipeline_mode=invariant),      # W2
            pl.BlockSpec((1, D), lambda i: (0, 0), pipeline_mode=invariant),      # b2
        ],
        out_specs=pl.BlockSpec((tm, D), lambda i: (i, 0)),
        compiler_params=pltpu.CompilerParams(
            dimension_semantics=("parallel",),        # rows shard across TCs on v7x
            vmem_limit_bytes=vmem_limit,
        ),
        cost_estimate=pl.CostEstimate(
            flops=flops, transcendentals=R * H, bytes_accessed=bytes_accessed),
    )(x2, w1_c, b1_2, w2_c, b2_2)
    return out.reshape(x.shape)


def reference(x, w1, b1, w2, b2, *, mxu_dtype=jnp.float32):
    """Pure-JAX FeedForward reference (exact erf-gelu, matching PyTorch)."""
    H = w1.shape[1] // 2
    h = jnp.dot(x.astype(mxu_dtype), w1.astype(mxu_dtype),
                preferred_element_type=jnp.float32) + b1.astype(jnp.float32)
    a, g = h[..., :H], h[..., H:]
    u = a * jax.nn.gelu(g, approximate=False)
    out = jnp.dot(u.astype(mxu_dtype), w2.astype(mxu_dtype),
                  preferred_element_type=jnp.float32) + b2.astype(jnp.float32)
    return out.astype(x.dtype)


if __name__ == "__main__":
    # FeedForward(dim=32, mult=4): Linear(32, 256) -> GEGLU (H=128) -> Dropout(0) -> Linear(128, 32)
    B, S, D, MULT = 2, 8, 32, 4
    H = D * MULT
    key = jax.random.PRNGKey(0)
    kx, k1, k2, k3, k4 = jax.random.split(key, 5)

    x = jax.random.normal(kx, (B, S, D), dtype=jnp.float32)
    w1 = jax.random.normal(k1, (D, 2 * H), dtype=jnp.float32) / math.sqrt(D)
    b1 = jax.random.normal(k2, (2 * H,), dtype=jnp.float32) * 0.01
    w2 = jax.random.normal(k3, (H, D), dtype=jnp.float32) / math.sqrt(H)
    b2 = jax.random.normal(k4, (D,), dtype=jnp.float32) * 0.01

    out = feed_forward(x, w1, b1, w2, b2)           # bf16-MXU path (default)
    jax.block_until_ready(out)

    ref_bf16 = reference(x, w1, b1, w2, b2, mxu_dtype=jnp.bfloat16)  # same operand quantization
    ref_f32 = reference(x, w1, b1, w2, b2, mxu_dtype=jnp.float32)    # full-precision semantics
    assert jnp.allclose(out, ref_bf16, atol=5e-3, rtol=5e-3), "mismatch vs bf16 reference"
    assert jnp.allclose(out, ref_f32, atol=5e-2, rtol=5e-2), "mismatch vs f32 reference"
    print("KERNEL_OK")
</pallas_src>

<mosaic_0001>
module attributes {stable_mosaic.version = 11 : i64} {
  func.func @ffn_kernel(%arg0: i32, %arg1: memref<16x32xbf16, #tpu.memory_space<vmem>>, %arg2: memref<32x256xbf16, #tpu.memory_space<vmem>>, %arg3: memref<1x256xf32, #tpu.memory_space<vmem>>, %arg4: memref<128x32xbf16, #tpu.memory_space<vmem>>, %arg5: memref<1x32xf32, #tpu.memory_space<vmem>>, %arg6: memref<16x32xf32, #tpu.memory_space<vmem>>) attributes {dimension_semantics = [#tpu.dimension_semantics<parallel>], iteration_bounds = array<i64: 1>, scalar_prefetch = 0 : i64, scratch_operands = 0 : i64, tpu.core_type = #tpu.core_type<tc>, window_params = [{transform_indices = @transform_0, window_bounds = array<i64: 16, 32>}, {pipeline_mode = #tpu.pipeline_mode<synchronous>, transform_indices = @transform_1, window_bounds = array<i64: 32, 256>}, {pipeline_mode = #tpu.pipeline_mode<synchronous>, transform_indices = @transform_2, window_bounds = array<i64: 1, 256>}, {pipeline_mode = #tpu.pipeline_mode<synchronous>, transform_indices = @transform_3, window_bounds = array<i64: 128, 32>}, {pipeline_mode = #tpu.pipeline_mode<synchronous>, transform_indices = @transform_4, window_bounds = array<i64: 1, 32>}, {transform_indices = @transform_5, window_bounds = array<i64: 16, 32>}]} {
    %c0 = arith.constant 0 : index
    %c0_0 = arith.constant 0 : index
    %0 = vector.load %arg1[%c0, %c0_0] : memref<16x32xbf16, #tpu.memory_space<vmem>>, vector<16x32xbf16>
    %c0_1 = arith.constant 0 : index
    %c0_2 = arith.constant 0 : index
    %1 = vector.load %arg2[%c0_1, %c0_2] : memref<32x256xbf16, #tpu.memory_space<vmem>>, vector<32x256xbf16>
    %cst = arith.constant dense<0.000000e+00> : vector<16x256xf32>
    %2 = tpu.matmul %0, %1, %cst {dimension_numbers = #tpu.dot_dimension_numbers<[1], [0], [0], [1], [0, 0, 1, 1], [], []>} : vector<16x32xbf16>, vector<32x256xbf16>, vector<16x256xf32> -> vector<16x256xf32>
    %c0_3 = arith.constant 0 : index
    %c0_4 = arith.constant 0 : index
    %3 = vector.load %arg3[%c0_3, %c0_4] : memref<1x256xf32, #tpu.memory_space<vmem>>, vector<1x256xf32>
    %4 = vector.broadcast %3 : vector<1x256xf32> to vector<16x256xf32>
    %5 = arith.addf %2, %4 : vector<16x256xf32>
    %6 = vector.extract_strided_slice %5 {offsets = [0, 0], sizes = [16, 128], strides = [1, 1]} : vector<16x256xf32> to vector<16x128xf32>
    %7 = vector.extract_strided_slice %5 {offsets = [0, 128], sizes = [16, 128], strides = [1, 1]} : vector<16x256xf32> to vector<16x128xf32>
    %cst_5 = arith.constant 5.000000e-01 : f32
    %8 = vector.broadcast %cst_5 : f32 to vector<16x128xf32>
    %9 = arith.mulf %8, %7 : vector<16x128xf32>
    %cst_6 = arith.constant 0.707106769 : f32
    %10 = vector.broadcast %cst_6 : f32 to vector<16x128xf32>
    %11 = arith.mulf %7, %10 : vector<16x128xf32>
    %12 = math.absf %11 : vector<16x128xf32>
    %cst_7 = arith.constant 0.327591091 : f32
    %13 = vector.broadcast %cst_7 : f32 to vector<16x128xf32>
    %14 = arith.mulf %13, %12 : vector<16x128xf32>
    %cst_8 = arith.constant 1.000000e+00 : f32
    %15 = vector.broadcast %cst_8 : f32 to vector<16x128xf32>
    %16 = arith.addf %15, %14 : vector<16x128xf32>
    %cst_9 = arith.constant 1.000000e+00 : f32
    %17 = vector.broadcast %cst_9 : f32 to vector<16x128xf32>
    %18 = arith.divf %17, %16 : vector<16x128xf32>
    %cst_10 = arith.constant 1.06140542 : f32
    %19 = vector.broadcast %cst_10 : f32 to vector<16x128xf32>
    %20 = arith.mulf %19, %18 : vector<16x128xf32>
    %cst_11 = arith.constant -1.45315206 : f32
    %21 = vector.broadcast %cst_11 : f32 to vector<16x128xf32>
    %22 = arith.addf %20, %21 : vector<16x128xf32>
    %23 = arith.mulf %22, %18 : vector<16x128xf32>
    %cst_12 = arith.constant 1.42141378 : f32
    %24 = vector.broadcast %cst_12 : f32 to vector<16x128xf32>
    %25 = arith.addf %23, %24 : vector<16x128xf32>
    %26 = arith.mulf %25, %18 : vector<16x128xf32>
    %cst_13 = arith.constant -0.284496725 : f32
    %27 = vector.broadcast %cst_13 : f32 to vector<16x128xf32>
    %28 = arith.addf %26, %27 : vector<16x128xf32>
    %29 = arith.mulf %28, %18 : vector<16x128xf32>
    %cst_14 = arith.constant 0.254829586 : f32
    %30 = vector.broadcast %cst_14 : f32 to vector<16x128xf32>
    %31 = arith.addf %29, %30 : vector<16x128xf32>
    %32 = arith.mulf %31, %18 : vector<16x128xf32>
    %33 = arith.mulf %12, %12 : vector<16x128xf32>
    %cst_15 = arith.constant 0.000000e+00 : f32
    %34 = vector.broadcast %cst_15 : f32 to vector<16x128xf32>
    %35 = arith.subf %34, %33 : vector<16x128xf32>
    %36 = math.exp %35 : vector<16x128xf32>
    %37 = arith.mulf %32, %36 : vector<16x128xf32>
    %cst_16 = arith.constant 1.000000e+00 : f32
    %38 = vector.broadcast %cst_16 : f32 to vector<16x128xf32>
    %39 = arith.subf %38, %37 : vector<16x128xf32>
    %cst_17 = arith.constant 0.000000e+00 : f32
    %40 = vector.broadcast %cst_17 : f32 to vector<16x128xf32>
    %41 = arith.cmpf olt, %11, %40 : vector<16x128xf32>
    %cst_18 = arith.constant 0.000000e+00 : f32
    %42 = vector.broadcast %cst_18 : f32 to vector<16x128xf32>
    %43 = arith.subf %42, %39 : vector<16x128xf32>
    %44 = arith.select %41, %43, %39 : vector<16x128xi1>, vector<16x128xf32>
    %cst_19 = arith.constant 1.000000e+00 : f32
    %45 = vector.broadcast %cst_19 : f32 to vector<16x128xf32>
    %46 = arith.addf %45, %44 : vector<16x128xf32>
    %47 = arith.mulf %9, %46 : vector<16x128xf32>
    %48 = arith.mulf %6, %47 : vector<16x128xf32>
    %49 = arith.truncf %48 : vector<16x128xf32> to vector<16x128xbf16>
    %c0_20 = arith.constant 0 : index
    %c0_21 = arith.constant 0 : index
    %50 = vector.load %arg4[%c0_20, %c0_21] : memref<128x32xbf16, #tpu.memory_space<vmem>>, vector<128x32xbf16>
    %cst_22 = arith.constant dense<0.000000e+00> : vector<16x32xf32>
    %51 = tpu.matmul %49, %50, %cst_22 {dimension_numbers = #tpu.dot_dimension_numbers<[1], [0], [0], [1], [0, 0, 1, 1], [], []>} : vector<16x128xbf16>, vector<128x32xbf16>, vector<16x32xf32> -> vector<16x32xf32>
    %c0_23 = arith.constant 0 : index
    %c0_24 = arith.constant 0 : index
    %52 = vector.load %arg5[%c0_23, %c0_24] : memref<1x32xf32, #tpu.memory_space<vmem>>, vector<1x32xf32>
    %53 = vector.broadcast %52 : vector<1x32xf32> to vector<16x32xf32>
    %54 = arith.addf %51, %53 : vector<16x32xf32>
    %c0_25 = arith.constant 0 : index
    %c0_26 = arith.constant 0 : index
    %55 = vector.load %arg6[%c0_25, %c0_26] : memref<16x32xf32, #tpu.memory_space<vmem>>, vector<16x32xf32>
    tpu.vector_store %arg6[%c0_25, %c0_26], %54 {strides = array<i32>} : memref<16x32xf32, #tpu.memory_space<vmem>>, vector<16x32xf32>,
    return
  }
  func.func @transform_0(%arg0: i32) -> (i32, i32) {
    %c0_i32 = arith.constant 0 : i32
    %c0_i32_0 = arith.constant 0 : i32
    return %arg0, %c0_i32 : i32, i32
  }
  func.func @transform_1(%arg0: i32) -> (i32, i32) {
    %c0_i32 = arith.constant 0 : i32
    %c0_i32_0 = arith.constant 0 : i32
    %c0_i32_1 = arith.constant 0 : i32
    return %c0_i32, %c0_i32_0 : i32, i32
  }
  func.func @transform_2(%arg0: i32) -> (i32, i32) {
    %c0_i32 = arith.constant 0 : i32
    %c0_i32_0 = arith.constant 0 : i32
    %c0_i32_1 = arith.constant 0 : i32
    return %c0_i32, %c0_i32_0 : i32, i32
  }
  func.func @transform_3(%arg0: i32) -> (i32, i32) {
    %c0_i32 = arith.constant 0 : i32
    %c0_i32_0 = arith.constant 0 : i32
    %c0_i32_1 = arith.constant 0 : i32
    return %c0_i32, %c0_i32_0 : i32, i32
  }
  func.func @transform_4(%arg0: i32) -> (i32, i32) {
    %c0_i32 = arith.constant 0 : i32
    %c0_i32_0 = arith.constant 0 : i32
    %c0_i32_1 = arith.constant 0 : i32
    return %c0_i32, %c0_i32_0 : i32, i32
  }
  func.func @transform_5(%arg0: i32) -> (i32, i32) {
    %c0_i32 = arith.constant 0 : i32
    %c0_i32_0 = arith.constant 0 : i32
    return %arg0, %c0_i32 : i32, i32
  }
}

</mosaic_0001>

<bundles_post_ra>
// kernel: tpu_custom_call.1
= control target key start
LH: loop header
LB: loop body
LE: loop exit
PB: predicated region body
PF: predicated region fallthrough
CT: control target
= control target key end

     0   :  { %s498_s0 = inlined_call_operand.vmem [shape: bf16[16,32], index: 0, kind: input, shape index: {}]   ;;  %s499_s1 = inlined_call_operand.vmem [shape: bf16[32,256], index: 1, kind: input, shape index: {}]   ;;  %s500_s2 = inlined_call_operand.vmem [shape: f32[1,256], index: 2, kind: input, shape index: {}]   ;;  %s501_s3 = inlined_call_operand.vmem [shape: bf16[128,32], index: 3, kind: input, shape index: {}]   ;;  %s502_s4 = inlined_call_operand.vmem [shape: f32[1,32], index: 4, kind: input, shape index: {}]   ;;  %s503_s5 = inlined_call_operand.hbm [shape: f32[16,32], index: 5, kind: output, shape index: {}]  }
   0x1   :  { %v333_v0 = vld [vmem:[%s499_s1 + $0x14] sm:$0xf]  ;;  %v292_v1 = vld [vmem:[%s499_s1 + $0x18] sm:$0xf0]  ;;  %v331_v2 = vld [vmem:[%s499_s1 + $0x4] sm:$0xf] }
   0x2   :  { %v295_v3 = vor.u32 %v333_v0, %v292_v1  ;;  %v284_v4 = vld [vmem:[%s499_s1 + $0x8] sm:$0xf0]  ;;  %v290_v5 = vld [vmem:[%s499_s1 + $0x10] sm:$0xf]  ;;  %v334_v6 = vld [vmem:[%s499_s1 + $0x14] sm:$0xf0] }
   0x3   :  { %v282_v7 = vld [vmem:[%s499_s1] sm:$0xf]  ;;  %v332_v8 = vld [vmem:[%s499_s1 + $0x4] sm:$0xf0]  ;;  %v287_v9 = vor.u32 %v331_v2, %v284_v4  ;;  %v291_v10 = vor.u32 %v334_v6, %v290_v5 }
   0x4   :  { %83 = vmatpush.bf16.msra.mxu1 %v295_v3 }
   0x5   :  { %10 = vsyncpa [#allocation3], 0  ;;  %69 = vmatpush.bf16.msra.mxu0 %v291_v10  ;;  %v283_v11 = vor.u32 %v332_v8, %v282_v7  ;;  %v330_v12 = vld [vmem:[%s498_s0] sm:$0xff]  ;;  %vm59_vm0 = vcmask 261120   ;;  %v342_v17 = vld [vmem:[%s501_s3 + $0x38] sm:$0xff]  ;;  %s381_s27 = smov [#allocation2]  }
   0x6   :  { %v446_v13 = vld [vmem:[%s500_s2] sm:$0x3]  ;;  %242 = vmatpush.bf16.msra.mxu2 %v342_v17  ;;  %v341_v19 = vld [vmem:[%s501_s3 + $0x30] sm:$0xff]  ;;  %v340_v27 = vld [vmem:[%s501_s3 + $0x28] sm:$0xff]  ;;  %s262_s28 = sshll.u32 %s381_s27, 4  ;;  %s264_s6 = sshll.u32 %s503_s5, 4  ;;  %s263_s28 = int_to_ptr.vmem [resolvable:$true] %s262_s28  ;;  %s265_s6 = int_to_ptr.hbm [resolvable:$true] %s264_s6 }
   0x7   :  { %v31_v14 = vperm.slane %v446_v13, 1  ;;  %v339_v32 = vld [vmem:[%s501_s3 + $0x20] sm:$0xff]  ;;  %v338_v37 = vld [vmem:[%s501_s3 + $0x18] sm:$0xff]  ;;  %v337_v42 = vld [vmem:[%s501_s3 + $0x10] sm:$0xff]  ;;  %s382_s7 = smov 128   ;;  %s383_s8 = smov 8  }
   0x8   :  { %84 = vmatpush.bf16.msra.mxu1 %v287_v9  ;;  %v336_v50 = vld [vmem:[%s501_s3 + $0x8] sm:$0xff]  ;;  %v335_v58 = vld [vmem:[%s501_s3] sm:$0xff] }
   0x9   :  { %70 = vmatpush.bf16.msra.mxu0 %v283_v11 }
   0xa   :  { %243 = vmatpush.bf16.msra.mxu2 %v341_v19 }
   0xb   :  { %297 = vmatmul.msk.bf16.vlgmr.msra.gmra.mxu1 %vm59_vm0, %v330_v12 }
   0xc   :  { %296 = vmatmul.msk.bf16.vlgmr.msra.gmra.mxu0 %vm59_vm0, %v330_v12 }
   0xe   :  { %244 = vmatpush.bf16.msra.mxu2 %v340_v27 }
  0x12   :  { %245 = vmatpush.bf16.msra.mxu2 %v339_v32 }
  0x16   :  { %246 = vmatpush.bf16.msra.mxu2 %v338_v37 }
  0x1a   :  { %247 = vmatpush.bf16.msra.mxu2 %v337_v42 }
  0x1e   :  { %248 = vmatpush.bf16.msra.mxu2 %v336_v50 }
  0x22   :  { %249 = vmatpush.bf16.msra.mxu2 %v335_v58 }
  0x88   :  { %v86_v15 = vpop.f32.mrf.mxu1 }
  0x89   :  { %v449_v16 = vadd.f32 %v86_v15, %v31_v14  ;;  %v72_v19 = vpop.f32.mrf.mxu0 }
  0x8b   :  { %v455_v18 = vmul.f32 0.70710677, %v449_v16  ;;  %v91_v32 = vmul.f32 0.5, %v449_v16 }
  0x8d   :  { %v95_v20 = vand.u32 2147483647, %v455_v18  ;;  %vm161_vm9 = vcmp.lt.f32.partialorder %v455_v18, 0.0 }
  0x8f   :  { %v97_v21 = vmul.f32 0.3275911, %v95_v20  ;;  %v149_v43 = vmul.f32 %v95_v20, %v95_v20 }
  0x90   :  { %v88_v22 = vpop.f32.mrf.mxu1 }
  0x91   :  { %v99_v23 = vadd.f32 1.0, %v97_v21  ;;  %v461_v24 = vadd.f32 %v88_v22, %v31_v14  ;;  %v151_v51 = vsub.f32 0.0, %v149_v43 }
  0x93   :  { %347 = vrcp.f32 %v99_v23  ;;  %v464_v25 = vmul.f32 0.70710677, %v461_v24  ;;  %v112_v34 = vand.u32 2147483648, %v99_v23  ;;  %v110_v36 = vand.u32 2147483647, %v99_v23 }
  0x94   :  { %vm106_vm2 = vweird.f32 %v99_v23  ;;  %v153_v59 = vmul.f32 1.442695, %v151_v51 }
  0x95   :  { %v96_v26 = vand.u32 2147483647, %v464_v25  ;;  %v113_v39 = vor.u32 1.1754944e-38, %v112_v34  ;;  %vm111_vm4 = vcmp.eq.f32.partialorder %v110_v36, 8.507059e+37  ;;  %vm162_vm10 = vcmp.lt.f32.partialorder %v464_v25, 0.0 }
  0x97   :  { %v98_v28 = vmul.f32 0.3275911, %v96_v26  ;;  %v150_v61 = vmul.f32 %v96_v26, %v96_v26 }
  0x99   :  { %v348_v29 = vpop.eup %347  ;;  %v100_v31 = vadd.f32 1.0, %v98_v28  ;;  %v152_v3 = vsub.f32 0.0, %v150_v61 }
  0x9a   :  { %v102_v30 = vmul.f32 %v348_v29, %v99_v23  ;;  %vm107_vm1 = vweird.f32 %v348_v29 }
  0x9b   :  { %349 = vrcp.f32 %v100_v31  ;;  %vm108_vm3 = vmor %vm106_vm2, %vm107_vm1  ;;  %v127_v48 = vand.u32 2147483648, %v100_v31  ;;  %v125_v53 = vand.u32 2147483647, %v100_v31  ;;  %vm121_vm6 = vweird.f32 %v100_v31 }
  0x9c   :  { %v103_v33 = vsub.f32 1.0, %v102_v30  ;;  %351 = vpow2.f32 %v153_v59  ;;  %v155_v8 = vmul.f32 1.442695, %v152_v3 }
  0x9d   :  { %v128_v56 = vor.u32 1.1754944e-38, %v127_v48  ;;  %vm126_vm8 = vcmp.eq.f32.partialorder %v125_v53, 8.507059e+37 }
  0x9e   :  { %v104_v35 = vmul.f32 %v348_v29, %v103_v33  ;;  %353 = vpow2.f32 %v155_v8  ;;  %v74_v33 = vpop.f32.mrf.mxu0 }
  0xa0   :  { %v105_v38 = vadd.f32 %v348_v29, %v104_v35  ;;  %v92_v35 = vmul.f32 0.5, %v461_v24 }
  0xa1   :  { %v350_v40 = vpop.eup %349 }
  0xa2   :  { %v109_v41 = vsel %vm108_vm3, %v348_v29, %v105_v38  ;;  %v117_v44 = vmul.f32 %v350_v40, %v100_v31  ;;  %vm122_vm5 = vweird.f32 %v350_v40  ;;  %v352_v10 = vpop.eup %351  ;;  %v30_v29 = vperm.slane %v446_v13, 0  ;;  %v346_v13 = vld [vmem:[%s502_s4] ss:$0 sm:$0xff] }
  0xa3   :  { %v114_v45 = vsel %vm111_vm4, %v113_v39, %v109_v41  ;;  %vm123_vm7 = vmor %vm121_vm6, %vm122_vm5 }
  0xa4   :  { %v131_v46 = vmul.f32 1.0614054, %v114_v45  ;;  %v118_v47 = vsub.f32 1.0, %v117_v44  ;;  %v354_v23 = vpop.eup %353  ;;  %v73_v36 = vadd.f32 %v72_v19, %v30_v29  ;;  %v75_v39 = vadd.f32 %v74_v33, %v30_v29 }
  0xa6   :  { %v133_v49 = vadd.f32 -1.4531521, %v131_v46  ;;  %v119_v52 = vmul.f32 %v350_v40, %v118_v47 }
  0xa8   :  { %v135_v54 = vmul.f32 %v133_v49, %v114_v45  ;;  %v120_v55 = vadd.f32 %v350_v40, %v119_v52 }
  0xaa   :  { %v137_v57 = vadd.f32 1.4214138, %v135_v54  ;;  %v124_v60 = vsel %vm123_vm7, %v350_v40, %v120_v55 }
  0xab   :  { %v129_v63 = vsel %vm126_vm8, %v128_v56, %v124_v60 }
  0xac   :  { %v139_v62 = vmul.f32 %v137_v57, %v114_v45  ;;  %v132_v0 = vmul.f32 1.0614054, %v129_v63 }
  0xae   :  { %v141_v1 = vadd.f32 -0.28449672, %v139_v62  ;;  %v134_v2 = vadd.f32 -1.4531521, %v132_v0 }
  0xb0   :  { %v143_v4 = vmul.f32 %v141_v1, %v114_v45  ;;  %v136_v5 = vmul.f32 %v134_v2, %v129_v63 }
  0xb2   :  { %v145_v6 = vadd.f32 0.2548296, %v143_v4  ;;  %v138_v7 = vadd.f32 1.4214138, %v136_v5 }
  0xb4   :  { %v147_v9 = vmul.f32 %v145_v6, %v114_v45  ;;  %v140_v11 = vmul.f32 %v138_v7, %v129_v63 }
  0xb6   :  { %v157_v12 = vmul.f32 %v352_v10, %v147_v9  ;;  %v142_v14 = vadd.f32 -0.28449672, %v140_v11 }
  0xb8   :  { %v159_v15 = vsub.f32 1.0, %v157_v12  ;;  %v144_v17 = vmul.f32 %v142_v14, %v129_v63 }
  0xba   :  { %v163_v20 = vsub.f32 0.0, %v159_v15  ;;  %v146_v21 = vadd.f32 0.2548296, %v144_v17 }
  0xbc   :  { %v148_v22 = vmul.f32 %v146_v21, %v129_v63  ;;  %v165_v26 = vsel %vm161_vm9, %v163_v20, %v159_v15 }
  0xbd   :  { %v167_v30 = vadd.f32 1.0, %v165_v26 }
  0xbe   :  { %v158_v27 = vmul.f32 %v354_v23, %v148_v22 }
  0xbf   :  { %v169_v37 = vmul.f32 %v167_v30, %v91_v32 }
  0xc0   :  { %v160_v28 = vsub.f32 1.0, %v158_v27 }
  0xc1   :  { %v171_v40 = vmul.f32 %v169_v37, %v73_v36 }
  0xc2   :  { %v164_v31 = vsub.f32 0.0, %v160_v28 }
  0xc4   :  { %v166_v34 = vsel %vm162_vm10, %v164_v31, %v160_v28 }
  0xc5   :  { %v168_v38 = vadd.f32 1.0, %v166_v34 }
  0xc7   :  { %v170_v18 = vmul.f32 %v168_v38, %v92_v35 }
  0xc9   :  { %v172_v41 = vmul.f32 %v170_v18, %v75_v39 }
  0xcb   :  { %v173_v42 = vpack.c.bf16 %v172_v41, %v171_v40 }
  0xcd   :  { %250 = vmatmul.bf16.vlgmr.msra.gmra.mxu2 %v173_v42 }
 0x150   :  { %v251_v16 = vpop.f32.mrf.mxu2 }
 0x151   :  { %v252_v43 = vadd.f32 %v346_v13, %v251_v16 }
 0x153   :  { %256 = vst.msk [vmem:[#allocation2] sm:$0xff] %vm59_vm0, %v252_v43 }
 0x158   :  { %v253_v24 = vpop.f32.mrf.mxu2 }
 0x159   :  { %v254_v25 = vadd.f32 %v346_v13, %v253_v24 }
 0x15b   :  { %257 = vst.msk [vmem:[#allocation2 + $0x8] sm:$0xff] %vm59_vm0, %v254_v25 }
 0x15c   :  { %270 = dma.vmem_to_hbm [thread:$0]  %s263_s28, 256, %s265_s6, [#allocation3], %s382_s7, %s382_s7, %s383_s8  }
 0x15d   :  { %379 = dma.done.wait [#allocation3], 256  }
 0x15e   :  { %380 = vsyncadd [#allocation3], 4294967040 }
 0x15f   :  { %275 = vsyncpa [#allocation3], 1 }

</bundles_post_ra>
